<compile_context>
chip_gen: v7x
topology: tpu7x:2x2x1
jax: 0.10.0
libtpu: 0.0.40
codegen_flags: <defaults>
</compile_context>

<pallas_src>
import math
from functools import partial
from random import random, seed as py_seed

import jax
import jax.numpy as jnp
from jax import lax
from jax.experimental import pallas as pl
from jax.experimental.pallas import tpu as pltpu


# ----------------------------------------------------------------------------
# Fused kernel: (optional hflip) -> 1x1 channel mix -> ReLU -> global mean pool
# ----------------------------------------------------------------------------
def _disc_kernel(flip_ref, x_ref, w1t_ref, b1_ref, out_ref, acc_ref,
                 *, C, HT, W, HID, RPI, inv_hw):
    """One (batch b, row-block s) grid step."""
    s = pl.program_id(1)

    @pl.when(s == 0)
    def _init():
        acc_ref[...] = jnp.zeros_like(acc_ref)

    # Loop-invariant broadcasts hoisted out of the row loop (JAX does not CSE
    # broadcast_in_dim; emitting them per-row re-does the work every iteration).
    w1t = w1t_ref[...].astype(jnp.float32)                          # (HID, C)
    wb = [jnp.broadcast_to(w1t[:, c:c + 1], (HID, W)) for c in range(C)]
    bb = jnp.broadcast_to(b1_ref[...].astype(jnp.float32), (HID, W))

    def chunk_body(step, acc_w):
        r0 = pl.multiple_of(step * RPI, RPI)                        # aligned sublane load
        chunk = x_ref[0, :, pl.ds(r0, RPI), :].astype(jnp.float32)  # (C, RPI, W)
        for r in range(RPI):                                        # short static unroll
            hr = bb
            for c in range(C):                                      # C VPU mul+adds / row
                hr = hr + wb[c] * chunk[c:c + 1, r, :]              # (HID, W)
            acc_w = acc_w + jnp.maximum(hr, 0.0)                    # bias already in bb
        return acc_w

    # relu(1x1 conv) summed over the rows of this block; HID on sublanes,
    # W on lanes, bounded vreg pressure inside the fori_loop.
    acc_w = lax.fori_loop(0, HT // RPI, chunk_body,
                          jnp.zeros((HID, W), jnp.float32))

    do_flip = flip_ref[0] != 0

    # random_hflip, fused.  The 1x1 channel mix + ReLU act per pixel, so
    # flipping the input along W is exactly equivalent to flipping the
    # row-accumulated feature map along W.  The reverse is therefore applied
    # once per row block, only in the flip branch (no selects, no work when not
    # augmenting), as a one-hot permutation matmul on the otherwise-idle MXU.
    # TODO(synk): a spatially-aware D would need the reverse applied to each
    # loaded chunk instead of to acc_w.
    @pl.when(do_flip)
    def _acc_flipped():
        ii = lax.broadcasted_iota(jnp.int32, (W, W), 0)
        jj = lax.broadcasted_iota(jnp.int32, (W, W), 1)
        rev = (ii + jj == W - 1).astype(jnp.float32)                # reversal permutation
        acc_rev = jnp.dot(acc_w, rev, preferred_element_type=jnp.float32)
        acc_ref[...] += jnp.sum(acc_rev, axis=1, keepdims=True)

    @pl.when(jnp.logical_not(do_flip))
    def _acc_plain():
        acc_ref[...] += jnp.sum(acc_w, axis=1, keepdims=True)

    # Lane-dense pooled features, written exactly once per batch element.
    @pl.when(s == pl.num_programs(1) - 1)
    def _finalize():
        pooled = acc_ref[...] * inv_hw                              # (HID, 1)
        out_ref[...] = jnp.transpose(pooled)[None].astype(out_ref.dtype)  # (1,1,HID)


def _pick_row_tile(C, H, W, itemsize):
    """Largest row block whose double-buffered input block fits a conservative
    16 MiB budget, so the default 32 MiB scoped VMEM works on v5e/v6e (128 MiB)
    and v7x (64 MiB).  Whole image per grid step whenever possible."""
    budget = 16 * 1024 * 1024
    if 2 * C * H * W * itemsize <= budget or H % 8 != 0:
        return H
    ht = max(8, min(H, (budget // (2 * C * W * itemsize)) // 8 * 8))
    while H % ht:
        ht -= 8
    return ht


def _pooled_hidden(images, flip_flag, w1t_pad, b1col_pad):
    """Fused Pallas call returning pooled hidden features, shape (B, HID_PAD)."""
    B, C, H, W = images.shape
    HID = w1t_pad.shape[0]                      # multiple of 8 (sublane aligned)
    HT = _pick_row_tile(C, H, W, images.dtype.itemsize)
    RPI = 8 if HT % 8 == 0 else 1               # rows per fori-loop iteration
    inv_hw = 1.0 / float(H * W)

    kernel = partial(_disc_kernel, C=C, HT=HT, W=W, HID=HID, RPI=RPI,
                     inv_hw=inv_hw)

    # TODO(synk): for W < 128 only W of 128 lanes are live; a flattened
    # (B, C, H*W) spatial layout would pack lanes fully for tiny images.
    grid_spec = pltpu.PrefetchScalarGridSpec(
        num_scalar_prefetch=1,                  # flip flag -> SMEM
        grid=(B, H // HT),                      # batch (parallel) x row blocks (reduction)
        in_specs=[
            pl.BlockSpec((1, C, HT, W), lambda b, s, flip: (b, 0, s, 0)),
            pl.BlockSpec((HID, C), lambda b, s, flip: (0, 0)),
            pl.BlockSpec((HID, 1), lambda b, s, flip: (0, 0)),
        ],
        out_specs=pl.BlockSpec((1, 1, HID), lambda b, s, flip: (b, 0, 0)),
        scratch_shapes=[pltpu.VMEM((HID, 1), jnp.float32)],
    )
    cost = pl.CostEstimate(
        flops=2 * B * C * H * W * HID,          # true (8-aligned) hidden size
        transcendentals=0,
        bytes_accessed=(images.size * images.dtype.itemsize
                        + (w1t_pad.size + b1col_pad.size + B * HID) * 4),
    )
    pooled = pl.pallas_call(
        kernel,
        out_shape=jax.ShapeDtypeStruct((B, 1, HID), jnp.float32),
        grid_spec=grid_spec,
        compiler_params=pltpu.CompilerParams(
            dimension_semantics=("parallel", "arbitrary")),
        cost_estimate=cost,
    )(flip_flag, images, w1t_pad, b1col_pad)
    return pooled[:, 0, :]                      # (B, HID_PAD), HID on lanes


@partial(jax.jit, static_argnames=("detach",))
def _aug_forward(images, flip_flag, w1t_pad, b1col_pad, w2, b2, *, detach=False):
    if detach:                                  # images.detach()
        images = lax.stop_gradient(images)
    pooled = _pooled_hidden(images, flip_flag, w1t_pad, b1col_pad)
    hid = w2.shape[0]
    # Tiny (B, HID) @ (HID, 1) projection stays in plain XLA; the kernel output
    # is already a lane-dense pooled feature block.
    return pooled[:, :hid] @ w2 + b2


# ----------------------------------------------------------------------------
# Reference-API helpers
# ----------------------------------------------------------------------------
def random_hflip(tensor, prob):
    """Standalone equivalent of the reference random_hflip (plain XLA flip).
    AugWrapper does NOT call this; it fuses the flip into the D kernel."""
    if prob < random():
        return tensor
    return jnp.flip(tensor, axis=3)


def make_discriminator_params(key, channels, hidden):
    k1, k2, k3, k4 = jax.random.split(key, 4)
    w1 = jax.random.normal(k1, (channels, hidden), jnp.float32) / math.sqrt(channels)
    b1 = 0.1 * jax.random.normal(k2, (hidden,), jnp.float32)
    w2 = jax.random.normal(k3, (hidden, 1), jnp.float32) / math.sqrt(hidden)
    b2 = 0.1 * jax.random.normal(k4, (1, 1), jnp.float32)
    return (w1, b1, w2, b2)


class AugWrapper:
    """Pallas port of stylegan2 AugWrapper with a synthetic discriminator
    D(x) = Linear(mean_{H,W}(relu(1x1Conv(x))))."""

    def __init__(self, D_params, image_size):
        w1, b1, w2, b2 = D_params               # (C,HID), (HID,), (HID,1), (1,1)
        C, hid = w1.shape
        hid_pad = ((hid + 7) // 8) * 8          # sublane-align only (NOT 128)
        # Padded hidden units have zero weight and bias -> relu gives exactly 0,
        # so slicing [:hid] in the wrapper recovers the exact result.
        self._w1t = jnp.zeros((hid_pad, C), jnp.float32).at[:hid, :].set(
            jnp.asarray(w1, jnp.float32).T)
        self._b1c = jnp.zeros((hid_pad, 1), jnp.float32).at[:hid, 0].set(
            jnp.asarray(b1, jnp.float32).reshape(-1))
        self._w2 = jnp.asarray(w2, jnp.float32)
        self._b2 = jnp.asarray(b2, jnp.float32)

    def _forward(self, images, flip, detach=False):
        flip_flag = jnp.asarray([flip], dtype=jnp.int32)
        return _aug_forward(images, flip_flag, self._w1t, self._b1c,
                            self._w2, self._b2, detach=bool(detach))

    def __call__(self, images, prob=0.0, types=(), detach=False):
        # Host-side RNG decisions mirror the PyTorch module; the flip itself is
        # executed inside the fused kernel via a scalar-prefetch flag so the
        # augmented and non-augmented calls share a single trace.
        flip = 0
        if random() < prob:
            flip = 0 if 0.5 < random() else 1   # random_hflip(images, prob=0.5)
            # TODO(synk): DiffAugment policies (color/translation/cutout) are
            # not ported; with types=[] (as at the reference call sites) it is
            # a no-op.
        return self._forward(images, flip, detach=detach)


if __name__ == "__main__":
    py_seed(0)                                  # deterministic host RNG decisions
    key = jax.random.PRNGKey(0)
    k_img, k_par = jax.random.split(key)

    B, C, H, W = 2, 4, 16, 16
    images = jax.random.normal(k_img, (B, C, H, W), jnp.float32)

    D_params = make_discriminator_params(k_par, channels=C, hidden=32)
    wrapper = AugWrapper(D_params, image_size=H)

    # Module-level paths (host RNG decides augmentation, like the reference).
    logits_plain = wrapper(images)                              # prob=0.0
    logits_aug = wrapper(images, prob=1.0, types=[], detach=True)
    jax.block_until_ready(logits_plain)
    jax.block_until_ready(logits_aug)
    assert logits_plain.shape == (B, 1) and logits_aug.shape == (B, 1)

    # Deterministic correctness check of the fused kernel vs. pure JAX.
    w1, b1, w2, b2 = D_params

    def reference(x, flip):
        if flip:
            x = jnp.flip(x, axis=3)
        h = jax.nn.relu(jnp.einsum("bchw,ck->bkhw", x, w1)
                        + b1[None, :, None, None])
        return h.mean(axis=(2, 3)) @ w2 + b2

    for flip in (0, 1):
        got = wrapper._forward(images, flip)
        want = reference(images, flip)
        assert jnp.allclose(got, want, atol=1e-4, rtol=1e-4), (flip, got, want)

    print("KERNEL_OK")
</pallas_src>

<mosaic_0001>
module attributes {stable_mosaic.version = 11 : i64} {
  func.func @_disc_kernel(%arg0: i32, %arg1: i32, %arg2: memref<1xi32, #tpu.memory_space<smem>>, %arg3: memref<1x4x16x16xf32, #tpu.memory_space<vmem>>, %arg4: memref<32x4xf32, #tpu.memory_space<vmem>>, %arg5: memref<32x1xf32, #tpu.memory_space<vmem>>, %arg6: memref<1x1x32xf32, #tpu.memory_space<vmem>>, %arg7: memref<32x1xf32, #tpu.memory_space<vmem>>) attributes {dimension_semantics = [#tpu.dimension_semantics<parallel>, #tpu.dimension_semantics<arbitrary>], iteration_bounds = array<i64: 2, 1>, scalar_prefetch = 1 : i64, scratch_operands = 1 : i64, tpu.core_type = #tpu.core_type<tc>, window_params = [{transform_indices = @transform_0, window_bounds = array<i64: 1, 4, 16, 16>}, {pipeline_mode = #tpu.pipeline_mode<synchronous>, transform_indices = @transform_1, window_bounds = array<i64: 32, 4>}, {pipeline_mode = #tpu.pipeline_mode<synchronous>, transform_indices = @transform_2, window_bounds = array<i64: 32, 1>}, {transform_indices = @transform_3, window_bounds = array<i64: 1, 1, 32>}]} {
    %c0_i32 = arith.constant 0 : i32
    %0 = arith.cmpi eq, %arg1, %c0_i32 : i32
    %1 = arith.extui %0 : i1 to i32
    %c0_i32_0 = arith.constant 0 : i32
    %2 = arith.cmpi ne, %1, %c0_i32_0 : i32
    scf.if %2 {
      %cst_12 = arith.constant 0.000000e+00 : f32
      %32 = vector.broadcast %cst_12 : f32 to vector<32x1xf32>
      %c0_13 = arith.constant 0 : index
      %c0_14 = arith.constant 0 : index
      %33 = vector.load %arg7[%c0_13, %c0_14] : memref<32x1xf32, #tpu.memory_space<vmem>>, vector<32x1xf32>
      tpu.vector_store %arg7[%c0_13, %c0_14], %32 {strides = array<i32>} : memref<32x1xf32, #tpu.memory_space<vmem>>, vector<32x1xf32>,
    } else {
    }
    %c0 = arith.constant 0 : index
    %c0_1 = arith.constant 0 : index
    %3 = vector.load %arg4[%c0, %c0_1] : memref<32x4xf32, #tpu.memory_space<vmem>>, vector<32x4xf32>
    %4 = vector.extract_strided_slice %3 {offsets = [0, 0], sizes = [32, 1], strides = [1, 1]} : vector<32x4xf32> to vector<32x1xf32>
    %5 = vector.shape_cast %4 : vector<32x1xf32> to vector<32x1xf32>
    %6 = vector.broadcast %5 : vector<32x1xf32> to vector<32x16xf32>
    %7 = vector.extract_strided_slice %3 {offsets = [0, 1], sizes = [32, 1], strides = [1, 1]} : vector<32x4xf32> to vector<32x1xf32>
    %8 = vector.shape_cast %7 : vector<32x1xf32> to vector<32x1xf32>
    %9 = vector.broadcast %8 : vector<32x1xf32> to vector<32x16xf32>
    %10 = vector.extract_strided_slice %3 {offsets = [0, 2], sizes = [32, 1], strides = [1, 1]} : vector<32x4xf32> to vector<32x1xf32>
    %11 = vector.shape_cast %10 : vector<32x1xf32> to vector<32x1xf32>
    %12 = vector.broadcast %11 : vector<32x1xf32> to vector<32x16xf32>
    %13 = vector.extract_strided_slice %3 {offsets = [0, 3], sizes = [32, 1], strides = [1, 1]} : vector<32x4xf32> to vector<32x1xf32>
    %14 = vector.shape_cast %13 : vector<32x1xf32> to vector<32x1xf32>
    %15 = vector.broadcast %14 : vector<32x1xf32> to vector<32x16xf32>
    %c0_2 = arith.constant 0 : index
    %c0_3 = arith.constant 0 : index
    %16 = vector.load %arg5[%c0_2, %c0_3] : memref<32x1xf32, #tpu.memory_space<vmem>>, vector<32x1xf32>
    %17 = vector.shape_cast %16 : vector<32x1xf32> to vector<32x1xf32>
    %18 = vector.broadcast %17 : vector<32x1xf32> to vector<32x16xf32>
    %cst = arith.constant 0.000000e+00 : f32
    %19 = vector.broadcast %cst : f32 to vector<32x16xf32>
    %c0_i32_4 = arith.constant 0 : i32
    %c2_i32 = arith.constant 2 : i32
    %20 = arith.addi %c0_i32_4, %c2_i32 : i32
    %c1_i32 = arith.constant 1 : i32
    %21 = scf.for %arg8 = %c0_i32_4 to %20 step %c1_i32 iter_args(%arg9 = %19) -> (vector<32x16xf32>)  : i32 {
      %c8_i32 = arith.constant 8 : i32
      %32 = arith.muli %arg8, %c8_i32 : i32
      %33 = tpu.assume_multiple %32, 8 : i32
      %c0_12 = arith.constant 0 : index
      %c0_13 = arith.constant 0 : index
      %34 = arith.index_cast %33 : i32 to index
      %c0_14 = arith.constant 0 : index
      %35 = vector.load %arg3[%c0_12, %c0_13, %34, %c0_14] : memref<1x4x16x16xf32, #tpu.memory_space<vmem>>, vector<1x4x8x16xf32>
      %36 = vector.shape_cast %35 : vector<1x4x8x16xf32> to vector<4x8x16xf32>
      %37 = vector.extract_strided_slice %36 {offsets = [0, 0, 0], sizes = [1, 1, 16], strides = [1, 1, 1]} : vector<4x8x16xf32> to vector<1x1x16xf32>
      %38 = vector.shape_cast %37 : vector<1x1x16xf32> to vector<1x16xf32>
      %39 = vector.broadcast %38 : vector<1x16xf32> to vector<32x16xf32>
      %40 = arith.mulf %6, %39 : vector<32x16xf32>
      %41 = arith.addf %18, %40 : vector<32x16xf32>
      %42 = vector.extract_strided_slice %36 {offsets = [1, 0, 0], sizes = [1, 1, 16], strides = [1, 1, 1]} : vector<4x8x16xf32> to vector<1x1x16xf32>
      %43 = vector.shape_cast %42 : vector<1x1x16xf32> to vector<1x16xf32>
      %44 = vector.broadcast %43 : vector<1x16xf32> to vector<32x16xf32>
      %45 = arith.mulf %9, %44 : vector<32x16xf32>
      %46 = arith.addf %41, %45 : vector<32x16xf32>
      %47 = vector.extract_strided_slice %36 {offsets = [2, 0, 0], sizes = [1, 1, 16], strides = [1, 1, 1]} : vector<4x8x16xf32> to vector<1x1x16xf32>
      %48 = vector.shape_cast %47 : vector<1x1x16xf32> to vector<1x16xf32>
      %49 = vector.broadcast %48 : vector<1x16xf32> to vector<32x16xf32>
      %50 = arith.mulf %12, %49 : vector<32x16xf32>
      %51 = arith.addf %46, %50 : vector<32x16xf32>
      %52 = vector.extract_strided_slice %36 {offsets = [3, 0, 0], sizes = [1, 1, 16], strides = [1, 1, 1]} : vector<4x8x16xf32> to vector<1x1x16xf32>
      %53 = vector.shape_cast %52 : vector<1x1x16xf32> to vector<1x16xf32>
      %54 = vector.broadcast %53 : vector<1x16xf32> to vector<32x16xf32>
      %55 = arith.mulf %15, %54 : vector<32x16xf32>
      %56 = arith.addf %51, %55 : vector<32x16xf32>
      %cst_15 = arith.constant 0.000000e+00 : f32
      %57 = vector.broadcast %cst_15 : f32 to vector<32x16xf32>
      %58 = arith.maximumf %56, %57 : vector<32x16xf32>
      %59 = arith.addf %arg9, %58 : vector<32x16xf32>
      %60 = vector.extract_strided_slice %36 {offsets = [0, 1, 0], sizes = [1, 1, 16], strides = [1, 1, 1]} : vector<4x8x16xf32> to vector<1x1x16xf32>
      %61 = vector.shape_cast %60 : vector<1x1x16xf32> to vector<1x16xf32>
      %62 = vector.broadcast %61 : vector<1x16xf32> to vector<32x16xf32>
      %63 = arith.mulf %6, %62 : vector<32x16xf32>
      %64 = arith.addf %18, %63 : vector<32x16xf32>
      %65 = vector.extract_strided_slice %36 {offsets = [1, 1, 0], sizes = [1, 1, 16], strides = [1, 1, 1]} : vector<4x8x16xf32> to vector<1x1x16xf32>
      %66 = vector.shape_cast %65 : vector<1x1x16xf32> to vector<1x16xf32>
      %67 = vector.broadcast %66 : vector<1x16xf32> to vector<32x16xf32>
      %68 = arith.mulf %9, %67 : vector<32x16xf32>
      %69 = arith.addf %64, %68 : vector<32x16xf32>
      %70 = vector.extract_strided_slice %36 {offsets = [2, 1, 0], sizes = [1, 1, 16], strides = [1, 1, 1]} : vector<4x8x16xf32> to vector<1x1x16xf32>
      %71 = vector.shape_cast %70 : vector<1x1x16xf32> to vector<1x16xf32>
      %72 = vector.broadcast %71 : vector<1x16xf32> to vector<32x16xf32>
      %73 = arith.mulf %12, %72 : vector<32x16xf32>
      %74 = arith.addf %69, %73 : vector<32x16xf32>
      %75 = vector.extract_strided_slice %36 {offsets = [3, 1, 0], sizes = [1, 1, 16], strides = [1, 1, 1]} : vector<4x8x16xf32> to vector<1x1x16xf32>
      %76 = vector.shape_cast %75 : vector<1x1x16xf32> to vector<1x16xf32>
      %77 = vector.broadcast %76 : vector<1x16xf32> to vector<32x16xf32>
      %78 = arith.mulf %15, %77 : vector<32x16xf32>
      %79 = arith.addf %74, %78 : vector<32x16xf32>
      %cst_16 = arith.constant 0.000000e+00 : f32
      %80 = vector.broadcast %cst_16 : f32 to vector<32x16xf32>
      %81 = arith.maximumf %79, %80 : vector<32x16xf32>
      %82 = arith.addf %59, %81 : vector<32x16xf32>
      %83 = vector.extract_strided_slice %36 {offsets = [0, 2, 0], sizes = [1, 1, 16], strides = [1, 1, 1]} : vector<4x8x16xf32> to vector<1x1x16xf32>
      %84 = vector.shape_cast %83 : vector<1x1x16xf32> to vector<1x16xf32>
      %85 = vector.broadcast %84 : vector<1x16xf32> to vector<32x16xf32>
      %86 = arith.mulf %6, %85 : vector<32x16xf32>
      %87 = arith.addf %18, %86 : vector<32x16xf32>
      %88 = vector.extract_strided_slice %36 {offsets = [1, 2, 0], sizes = [1, 1, 16], strides = [1, 1, 1]} : vector<4x8x16xf32> to vector<1x1x16xf32>
      %89 = vector.shape_cast %88 : vector<1x1x16xf32> to vector<1x16xf32>
      %90 = vector.broadcast %89 : vector<1x16xf32> to vector<32x16xf32>
      %91 = arith.mulf %9, %90 : vector<32x16xf32>
      %92 = arith.addf %87, %91 : vector<32x16xf32>
      %93 = vector.extract_strided_slice %36 {offsets = [2, 2, 0], sizes = [1, 1, 16], strides = [1, 1, 1]} : vector<4x8x16xf32> to vector<1x1x16xf32>
      %94 = vector.shape_cast %93 : vector<1x1x16xf32> to vector<1x16xf32>
      %95 = vector.broadcast %94 : vector<1x16xf32> to vector<32x16xf32>
      %96 = arith.mulf %12, %95 : vector<32x16xf32>
      %97 = arith.addf %92, %96 : vector<32x16xf32>
      %98 = vector.extract_strided_slice %36 {offsets = [3, 2, 0], sizes = [1, 1, 16], strides = [1, 1, 1]} : vector<4x8x16xf32> to vector<1x1x16xf32>
      %99 = vector.shape_cast %98 : vector<1x1x16xf32> to vector<1x16xf32>
      %100 = vector.broadcast %99 : vector<1x16xf32> to vector<32x16xf32>
      %101 = arith.mulf %15, %100 : vector<32x16xf32>
      %102 = arith.addf %97, %101 : vector<32x16xf32>
      %cst_17 = arith.constant 0.000000e+00 : f32
      %103 = vector.broadcast %cst_17 : f32 to vector<32x16xf32>
      %104 = arith.maximumf %102, %103 : vector<32x16xf32>
      %105 = arith.addf %82, %104 : vector<32x16xf32>
      %106 = vector.extract_strided_slice %36 {offsets = [0, 3, 0], sizes = [1, 1, 16], strides = [1, 1, 1]} : vector<4x8x16xf32> to vector<1x1x16xf32>
      %107 = vector.shape_cast %106 : vector<1x1x16xf32> to vector<1x16xf32>
      %108 = vector.broadcast %107 : vector<1x16xf32> to vector<32x16xf32>
      %109 = arith.mulf %6, %108 : vector<32x16xf32>
      %110 = arith.addf %18, %109 : vector<32x16xf32>
      %111 = vector.extract_strided_slice %36 {offsets = [1, 3, 0], sizes = [1, 1, 16], strides = [1, 1, 1]} : vector<4x8x16xf32> to vector<1x1x16xf32>
      %112 = vector.shape_cast %111 : vector<1x1x16xf32> to vector<1x16xf32>
      %113 = vector.broadcast %112 : vector<1x16xf32> to vector<32x16xf32>
      %114 = arith.mulf %9, %113 : vector<32x16xf32>
      %115 = arith.addf %110, %114 : vector<32x16xf32>
      %116 = vector.extract_strided_slice %36 {offsets = [2, 3, 0], sizes = [1, 1, 16], strides = [1, 1, 1]} : vector<4x8x16xf32> to vector<1x1x16xf32>
      %117 = vector.shape_cast %116 : vector<1x1x16xf32> to vector<1x16xf32>
      %118 = vector.broadcast %117 : vector<1x16xf32> to vector<32x16xf32>
      %119 = arith.mulf %12, %118 : vector<32x16xf32>
      %120 = arith.addf %115, %119 : vector<32x16xf32>
      %121 = vector.extract_strided_slice %36 {offsets = [3, 3, 0], sizes = [1, 1, 16], strides = [1, 1, 1]} : vector<4x8x16xf32> to vector<1x1x16xf32>
      %122 = vector.shape_cast %121 : vector<1x1x16xf32> to vector<1x16xf32>
      %123 = vector.broadcast %122 : vector<1x16xf32> to vector<32x16xf32>
      %124 = arith.mulf %15, %123 : vector<32x16xf32>
      %125 = arith.addf %120, %124 : vector<32x16xf32>
      %cst_18 = arith.constant 0.000000e+00 : f32
      %126 = vector.broadcast %cst_18 : f32 to vector<32x16xf32>
      %127 = arith.maximumf %125, %126 : vector<32x16xf32>
      %128 = arith.addf %105, %127 : vector<32x16xf32>
      %129 = vector.extract_strided_slice %36 {offsets = [0, 4, 0], sizes = [1, 1, 16], strides = [1, 1, 1]} : vector<4x8x16xf32> to vector<1x1x16xf32>
      %130 = vector.shape_cast %129 : vector<1x1x16xf32> to vector<1x16xf32>
      %131 = vector.broadcast %130 : vector<1x16xf32> to vector<32x16xf32>
      %132 = arith.mulf %6, %131 : vector<32x16xf32>
      %133 = arith.addf %18, %132 : vector<32x16xf32>
      %134 = vector.extract_strided_slice %36 {offsets = [1, 4, 0], sizes = [1, 1, 16], strides = [1, 1, 1]} : vector<4x8x16xf32> to vector<1x1x16xf32>
      %135 = vector.shape_cast %134 : vector<1x1x16xf32> to vector<1x16xf32>
      %136 = vector.broadcast %135 : vector<1x16xf32> to vector<32x16xf32>
      %137 = arith.mulf %9, %136 : vector<32x16xf32>
      %138 = arith.addf %133, %137 : vector<32x16xf32>
      %139 = vector.extract_strided_slice %36 {offsets = [2, 4, 0], sizes = [1, 1, 16], strides = [1, 1, 1]} : vector<4x8x16xf32> to vector<1x1x16xf32>
      %140 = vector.shape_cast %139 : vector<1x1x16xf32> to vector<1x16xf32>
      %141 = vector.broadcast %140 : vector<1x16xf32> to vector<32x16xf32>
      %142 = arith.mulf %12, %141 : vector<32x16xf32>
      %143 = arith.addf %138, %142 : vector<32x16xf32>
      %144 = vector.extract_strided_slice %36 {offsets = [3, 4, 0], sizes = [1, 1, 16], strides = [1, 1, 1]} : vector<4x8x16xf32> to vector<1x1x16xf32>
      %145 = vector.shape_cast %144 : vector<1x1x16xf32> to vector<1x16xf32>
      %146 = vector.broadcast %145 : vector<1x16xf32> to vector<32x16xf32>
      %147 = arith.mulf %15, %146 : vector<32x16xf32>
      %148 = arith.addf %143, %147 : vector<32x16xf32>
      %cst_19 = arith.constant 0.000000e+00 : f32
      %149 = vector.broadcast %cst_19 : f32 to vector<32x16xf32>
      %150 = arith.maximumf %148, %149 : vector<32x16xf32>
      %151 = arith.addf %128, %150 : vector<32x16xf32>
      %152 = vector.extract_strided_slice %36 {offsets = [0, 5, 0], sizes = [1, 1, 16], strides = [1, 1, 1]} : vector<4x8x16xf32> to vector<1x1x16xf32>
      %153 = vector.shape_cast %152 : vector<1x1x16xf32> to vector<1x16xf32>
      %154 = vector.broadcast %153 : vector<1x16xf32> to vector<32x16xf32>
      %155 = arith.mulf %6, %154 : vector<32x16xf32>
      %156 = arith.addf %18, %155 : vector<32x16xf32>
      %157 = vector.extract_strided_slice %36 {offsets = [1, 5, 0], sizes = [1, 1, 16], strides = [1, 1, 1]} : vector<4x8x16xf32> to vector<1x1x16xf32>
      %158 = vector.shape_cast %157 : vector<1x1x16xf32> to vector<1x16xf32>
      %159 = vector.broadcast %158 : vector<1x16xf32> to vector<32x16xf32>
      %160 = arith.mulf %9, %159 : vector<32x16xf32>
      %161 = arith.addf %156, %160 : vector<32x16xf32>
      %162 = vector.extract_strided_slice %36 {offsets = [2, 5, 0], sizes = [1, 1, 16], strides = [1, 1, 1]} : vector<4x8x16xf32> to vector<1x1x16xf32>
      %163 = vector.shape_cast %162 : vector<1x1x16xf32> to vector<1x16xf32>
      %164 = vector.broadcast %163 : vector<1x16xf32> to vector<32x16xf32>
      %165 = arith.mulf %12, %164 : vector<32x16xf32>
      %166 = arith.addf %161, %165 : vector<32x16xf32>
      %167 = vector.extract_strided_slice %36 {offsets = [3, 5, 0], sizes = [1, 1, 16], strides = [1, 1, 1]} : vector<4x8x16xf32> to vector<1x1x16xf32>
      %168 = vector.shape_cast %167 : vector<1x1x16xf32> to vector<1x16xf32>
      %169 = vector.broadcast %168 : vector<1x16xf32> to vector<32x16xf32>
      %170 = arith.mulf %15, %169 : vector<32x16xf32>
      %171 = arith.addf %166, %170 : vector<32x16xf32>
      %cst_20 = arith.constant 0.000000e+00 : f32
      %172 = vector.broadcast %cst_20 : f32 to vector<32x16xf32>
      %173 = arith.maximumf %171, %172 : vector<32x16xf32>
      %174 = arith.addf %151, %173 : vector<32x16xf32>
      %175 = vector.extract_strided_slice %36 {offsets = [0, 6, 0], sizes = [1, 1, 16], strides = [1, 1, 1]} : vector<4x8x16xf32> to vector<1x1x16xf32>
      %176 = vector.shape_cast %175 : vector<1x1x16xf32> to vector<1x16xf32>
      %177 = vector.broadcast %176 : vector<1x16xf32> to vector<32x16xf32>
      %178 = arith.mulf %6, %177 : vector<32x16xf32>
      %179 = arith.addf %18, %178 : vector<32x16xf32>
      %180 = vector.extract_strided_slice %36 {offsets = [1, 6, 0], sizes = [1, 1, 16], strides = [1, 1, 1]} : vector<4x8x16xf32> to vector<1x1x16xf32>
      %181 = vector.shape_cast %180 : vector<1x1x16xf32> to vector<1x16xf32>
      %182 = vector.broadcast %181 : vector<1x16xf32> to vector<32x16xf32>
      %183 = arith.mulf %9, %182 : vector<32x16xf32>
      %184 = arith.addf %179, %183 : vector<32x16xf32>
      %185 = vector.extract_strided_slice %36 {offsets = [2, 6, 0], sizes = [1, 1, 16], strides = [1, 1, 1]} : vector<4x8x16xf32> to vector<1x1x16xf32>
      %186 = vector.shape_cast %185 : vector<1x1x16xf32> to vector<1x16xf32>
      %187 = vector.broadcast %186 : vector<1x16xf32> to vector<32x16xf32>
      %188 = arith.mulf %12, %187 : vector<32x16xf32>
      %189 = arith.addf %184, %188 : vector<32x16xf32>
      %190 = vector.extract_strided_slice %36 {offsets = [3, 6, 0], sizes = [1, 1, 16], strides = [1, 1, 1]} : vector<4x8x16xf32> to vector<1x1x16xf32>
      %191 = vector.shape_cast %190 : vector<1x1x16xf32> to vector<1x16xf32>
      %192 = vector.broadcast %191 : vector<1x16xf32> to vector<32x16xf32>
      %193 = arith.mulf %15, %192 : vector<32x16xf32>
      %194 = arith.addf %189, %193 : vector<32x16xf32>
      %cst_21 = arith.constant 0.000000e+00 : f32
      %195 = vector.broadcast %cst_21 : f32 to vector<32x16xf32>
      %196 = arith.maximumf %194, %195 : vector<32x16xf32>
      %197 = arith.addf %174, %196 : vector<32x16xf32>
      %198 = vector.extract_strided_slice %36 {offsets = [0, 7, 0], sizes = [1, 1, 16], strides = [1, 1, 1]} : vector<4x8x16xf32> to vector<1x1x16xf32>
      %199 = vector.shape_cast %198 : vector<1x1x16xf32> to vector<1x16xf32>
      %200 = vector.broadcast %199 : vector<1x16xf32> to vector<32x16xf32>
      %201 = arith.mulf %6, %200 : vector<32x16xf32>
      %202 = arith.addf %18, %201 : vector<32x16xf32>
      %203 = vector.extract_strided_slice %36 {offsets = [1, 7, 0], sizes = [1, 1, 16], strides = [1, 1, 1]} : vector<4x8x16xf32> to vector<1x1x16xf32>
      %204 = vector.shape_cast %203 : vector<1x1x16xf32> to vector<1x16xf32>
      %205 = vector.broadcast %204 : vector<1x16xf32> to vector<32x16xf32>
      %206 = arith.mulf %9, %205 : vector<32x16xf32>
      %207 = arith.addf %202, %206 : vector<32x16xf32>
      %208 = vector.extract_strided_slice %36 {offsets = [2, 7, 0], sizes = [1, 1, 16], strides = [1, 1, 1]} : vector<4x8x16xf32> to vector<1x1x16xf32>
      %209 = vector.shape_cast %208 : vector<1x1x16xf32> to vector<1x16xf32>
      %210 = vector.broadcast %209 : vector<1x16xf32> to vector<32x16xf32>
      %211 = arith.mulf %12, %210 : vector<32x16xf32>
      %212 = arith.addf %207, %211 : vector<32x16xf32>
      %213 = vector.extract_strided_slice %36 {offsets = [3, 7, 0], sizes = [1, 1, 16], strides = [1, 1, 1]} : vector<4x8x16xf32> to vector<1x1x16xf32>
      %214 = vector.shape_cast %213 : vector<1x1x16xf32> to vector<1x16xf32>
      %215 = vector.broadcast %214 : vector<1x16xf32> to vector<32x16xf32>
      %216 = arith.mulf %15, %215 : vector<32x16xf32>
      %217 = arith.addf %212, %216 : vector<32x16xf32>
      %cst_22 = arith.constant 0.000000e+00 : f32
      %218 = vector.broadcast %cst_22 : f32 to vector<32x16xf32>
      %219 = arith.maximumf %217, %218 : vector<32x16xf32>
      %220 = arith.addf %197, %219 : vector<32x16xf32>
      scf.yield %220 : vector<32x16xf32>
    }
    %c2_i32_5 = arith.constant 2 : i32
    %c0_6 = arith.constant 0 : index
    %22 = memref.load %arg2[%c0_6] : memref<1xi32, #tpu.memory_space<smem>>
    %c0_i32_7 = arith.constant 0 : i32
    %23 = arith.cmpi ne, %22, %c0_i32_7 : i32
    %24 = arith.extui %23 : i1 to i32
    %c0_i32_8 = arith.constant 0 : i32
    %25 = arith.cmpi ne, %24, %c0_i32_8 : i32
    scf.if %25 {
      %32 = tpu.iota {dimensions = array<i32: 0>} : vector<16x16xi32>
      %33 = tpu.iota {dimensions = array<i32: 1>} : vector<16x16xi32>
      %34 = arith.addi %32, %33 : vector<16x16xi32>
      %c15_i32 = arith.constant 15 : i32
      %35 = vector.broadcast %c15_i32 : i32 to vector<16x16xi32>
      %36 = arith.cmpi eq, %34, %35 : vector<16x16xi32>
      %37 = arith.extui %36 : vector<16x16xi1> to vector<16x16xi32>
      %38 = arith.sitofp %37 : vector<16x16xi32> to vector<16x16xf32>
      %cst_12 = arith.constant dense<0.000000e+00> : vector<32x16xf32>
      %39 = tpu.matmul %21, %38, %cst_12 {dimension_numbers = #tpu.dot_dimension_numbers<[1], [0], [0], [1], [0, 0, 1, 1], [], []>} : vector<32x16xf32>, vector<16x16xf32>, vector<32x16xf32> -> vector<32x16xf32>
      %c0_13 = arith.constant 0 : index
      %c0_14 = arith.constant 0 : index
      %40 = vector.load %arg7[%c0_13, %c0_14] : memref<32x1xf32, #tpu.memory_space<vmem>>, vector<32x1xf32>
      %cst_15 = arith.constant dense<0.000000e+00> : vector<32xf32>
      %41 = vector.multi_reduction <add>, %39, %cst_15 [1] : vector<32x16xf32> to vector<32xf32>
      %42 = vector.shape_cast %41 : vector<32xf32> to vector<32x1xf32>
      %43 = arith.addf %40, %42 : vector<32x1xf32>
      %c0_16 = arith.constant 0 : index
      %c0_17 = arith.constant 0 : index
      %44 = vector.load %arg7[%c0_16, %c0_17] : memref<32x1xf32, #tpu.memory_space<vmem>>, vector<32x1xf32>
      tpu.vector_store %arg7[%c0_16, %c0_17], %43 {strides = array<i32>} : memref<32x1xf32, #tpu.memory_space<vmem>>, vector<32x1xf32>,
    } else {
    }
    %true = arith.constant true
    %26 = arith.xori %23, %true : i1
    %27 = arith.extui %26 : i1 to i32
    %c0_i32_9 = arith.constant 0 : i32
    %28 = arith.cmpi ne, %27, %c0_i32_9 : i32
    scf.if %28 {
      %c0_12 = arith.constant 0 : index
      %c0_13 = arith.constant 0 : index
      %32 = vector.load %arg7[%c0_12, %c0_13] : memref<32x1xf32, #tpu.memory_space<vmem>>, vector<32x1xf32>
      %cst_14 = arith.constant dense<0.000000e+00> : vector<32xf32>
      %33 = vector.multi_reduction <add>, %21, %cst_14 [1] : vector<32x16xf32> to vector<32xf32>
      %34 = vector.shape_cast %33 : vector<32xf32> to vector<32x1xf32>
      %35 = arith.addf %32, %34 : vector<32x1xf32>
      %c0_15 = arith.constant 0 : index
      %c0_16 = arith.constant 0 : index
      %36 = vector.load %arg7[%c0_15, %c0_16] : memref<32x1xf32, #tpu.memory_space<vmem>>, vector<32x1xf32>
      tpu.vector_store %arg7[%c0_15, %c0_16], %35 {strides = array<i32>} : memref<32x1xf32, #tpu.memory_space<vmem>>, vector<32x1xf32>,
    } else {
    }
    %c0_i32_10 = arith.constant 0 : i32
    %29 = arith.cmpi eq, %arg1, %c0_i32_10 : i32
    %30 = arith.extui %29 : i1 to i32
    %c0_i32_11 = arith.constant 0 : i32
    %31 = arith.cmpi ne, %30, %c0_i32_11 : i32
    scf.if %31 {
      %c0_12 = arith.constant 0 : index
      %c0_13 = arith.constant 0 : index
      %32 = vector.load %arg7[%c0_12, %c0_13] : memref<32x1xf32, #tpu.memory_space<vmem>>, vector<32x1xf32>
      %cst_14 = arith.constant 3.906250e-03 : f32
      %33 = vector.broadcast %cst_14 : f32 to vector<32x1xf32>
      %34 = arith.mulf %32, %33 : vector<32x1xf32>
      %35 = tpu.transpose %34, [1, 0] : vector<32x1xf32> -> vector<1x32xf32>
      %36 = vector.shape_cast %35 : vector<1x32xf32> to vector<1x1x32xf32>
      %c0_15 = arith.constant 0 : index
      %c0_16 = arith.constant 0 : index
      %c0_17 = arith.constant 0 : index
      %37 = vector.load %arg6[%c0_15, %c0_16, %c0_17] : memref<1x1x32xf32, #tpu.memory_space<vmem>>, vector<1x1x32xf32>
      tpu.vector_store %arg6[%c0_15, %c0_16, %c0_17], %36 {strides = array<i32>} : memref<1x1x32xf32, #tpu.memory_space<vmem>>, vector<1x1x32xf32>,
    } else {
    }
    return
  }
  func.func @transform_0(%arg0: i32, %arg1: i32, %arg2: memref<1xi32, #tpu.memory_space<smem>>) -> (i32, i32, i32, i32) {
    %c0_i32 = arith.constant 0 : i32
    %c0_i32_0 = arith.constant 0 : i32
    %c0_i32_1 = arith.constant 0 : i32
    return %arg0, %c0_i32, %arg1, %c0_i32_0 : i32, i32, i32, i32
  }
  func.func @transform_1(%arg0: i32, %arg1: i32, %arg2: memref<1xi32, #tpu.memory_space<smem>>) -> (i32, i32) {
    %c0_i32 = arith.constant 0 : i32
    %c0_i32_0 = arith.constant 0 : i32
    %c0_i32_1 = arith.constant 0 : i32
    return %c0_i32, %c0_i32_0 : i32, i32
  }
  func.func @transform_2(%arg0: i32, %arg1: i32, %arg2: memref<1xi32, #tpu.memory_space<smem>>) -> (i32, i32) {
    %c0_i32 = arith.constant 0 : i32
    %c0_i32_0 = arith.constant 0 : i32
    %c0_i32_1 = arith.constant 0 : i32
    return %c0_i32, %c0_i32_0 : i32, i32
  }
  func.func @transform_3(%arg0: i32, %arg1: i32, %arg2: memref<1xi32, #tpu.memory_space<smem>>) -> (i32, i32, i32) {
    %c0_i32 = arith.constant 0 : i32
    %c0_i32_0 = arith.constant 0 : i32
    %c0_i32_1 = arith.constant 0 : i32
    return %arg0, %c0_i32, %c0_i32_0 : i32, i32, i32
  }
}

</mosaic_0001>

<bundles_post_ra>
// kernel: _aug_forward.1
= control target key start
LH: loop header
LB: loop body
LE: loop exit
PB: predicated region body
PF: predicated region fallthrough
CT: control target
= control target key end

     0   :  { %s1927_s0 = inlined_call_operand.<no memory space> [shape: s32[1], index: 0, kind: input, shape index: {}]   ;;  %s1928_s1 = inlined_call_operand.hbm [shape: f32[2,4,16,16], index: 1, kind: input, shape index: {}]   ;;  %s1929_s2 = inlined_call_operand.vmem [shape: f32[32,4], index: 2, kind: input, shape index: {}]   ;;  %s1930_s3 = inlined_call_operand.vmem [shape: f32[32,1], index: 3, kind: input, shape index: {}]   ;;  %s1931_s4 = inlined_call_operand.vmem [shape: f32[2,1,32], index: 4, kind: output, shape index: {}]  }
   0x1   :  { %9 = sst [smem:[#allocation4]] %s1927_s0 }
   0x2   :  { %10 = vsyncpa [#allocation6], 0 }
   0x3   :  { %12 = vsyncpa [#allocation6 + $0x1], 0  ;;  %s1396_s17 = smov 0   ;;  %s1398_s18 = smov 0  }
   0x4   :  { %s1400_s19 = smov 0   ;;  %s1402_s20 = smov 0  }
   0x5   :  { %s1404_s21 = smov 0   ;;  %s1406_s22 = smov 0  }
   0x6 LB: > { %s1080_s0 = sadd.s32 4294967295, %s1337_s22   ;;  %s30_s23 = sadd.s32 1, %s1333_s21  ;;  %s1337_s22 = sphi %s1406_s22, %s18_s22   ;;  %s1333_s21 = sphi %s1404_s21, %s1954_s21   ;;  %s1329_s20 = sphi %s1402_s20, %s1953_s20   ;;  %s1325_s19 = sphi %s1400_s19, %s1952_s19   ;;  %s1321_s18 = sphi %s1398_s18, %s1951_s18   ;;  %s1317_s17 = sphi %s1396_s17, %s1950_s17  }
   0x7   : > { %p32_p0 = scmp.ge.s32.totalorder %s30_s23, 2  ;;  %s39_s24 = sadd.s32 1, %s1325_s19 }
   0x8   : > { %p46_p1 = scmp.ne.s32.totalorder %s1325_s19, %s1321_s18  ;;  %p47_p2 = scmp.eq.s32.totalorder %s1337_s22, 0 }
   0x9   : > { %s1956_s23 = smov (%p32_p0, %s30_s23), 0  ;;  %p52_p4 = scmp.ne.s32.totalorder %s1321_s18, %s1317_s17 }
   0xa   : > { %p1432_p3 = por %p47_p2, %p46_p1  ;;  %s34_s26 = ssub.s32 %s1333_s21, %s1956_s23 }
   0xb   : > { %p53_p5 = scmp.eq.s32.totalorder %s1080_s0, 0  ;;  %p37_p6 = scmp.eq.s32.totalorder %s34_s26, 0 }
   0xc   : > { %p1131_p8 = scmp.lt.s32.totalorder %s1337_s22, 2  ;;  %s150_s29 = sand.u32 1, %s1325_s19  }
   0xd   : > { %p1439_p7 = por %p53_p5, %p52_p4  ;;  %s1102_s30 = sshll.u32 %s1333_s21, 10 }
   0xe   : > { %s1445_s28 = scalar_select %p37_p6, %s1325_s19, %s39_s24  }
   0xf   : > { %s1084_s5 = sshll.u32 %s150_s29, 6  ;;  %s1452_s8 = scalar_lea.hbm %s1928_s1, %s1102_s30 }
  0x10   : > { %s154_s9 = scalar_lea.vmem [#allocation5], %s1084_s5  ;;  %p1456_p9 = pnand %p1131_p8, %p1432_p3 }
  0x11   : > { %s163_s10 = sshll.u32 %s154_s9, 4  ;;  %s1462_s12 = scalar_lea.sflag [#allocation6], %s150_s29  ;;  %s1460_s10 = int_to_ptr.vmem [resolvable:$true] %s163_s10 }
  0x12   : > { %s1237_s13 = scalar_lea.hbm %s1452_s8, 1024  ;;  %p1239_p11 = pneg %p1456_p9 }
  0x13   : > { %p1238_p10 = scmp.ne.s32.totalorder %s1452_s8, %s1237_s13  ;;  %s1242_s16 = scalar_lea.hbm %s1928_s1, 2048 }
  0x14   : > { %p1243_p0 = scmp.lt.u32.totalorder %s1452_s8, %s1928_s1  ;;  %p1244_p1 = scmp.lt.u32.totalorder %s1242_s16, %s1237_s13 }
  0x15   : > { %p1240_p12 = pnand %p1239_p11, %p1238_p10  ;;  %p1246_p3 = scmp.lt.u32.totalorder %s1237_s13, %s1452_s8 }
  0x16   : > { %p1245_p2 = por %p1244_p1, %p1243_p0 }
  0x17   : > { %p1241_p13 = pneg %p1240_p12 }
  0x18   : > { %p1247_p4 = por %p1246_p3, %p1245_p2 }
  0x1a   : > { %p1248_p5 = pnand %p1247_p4, %p1241_p13 }
  0x1c   : > { %1251 = shalt.err (!%p1248_p5)
}
  0x1d   : > { %s1252_s24 = scalar_lea.vmem %s1460_s10, 1024  ;;  %s1359_s25 = smov [#allocation5]  }
  0x1e   : > { %p1253_p6 = scmp.ne.s32.totalorder %s1460_s10, %s1252_s24  ;;  %s1257_s26 = sshll.u32 %s1359_s25, 4  ;;  %s1258_s26 = int_to_ptr.vmem [resolvable:$false] %s1257_s26 }
  0x1f   : > { %s1259_s29 = scalar_lea.vmem %s1258_s26, 2048  ;;  %p1260_p12 = scmp.lt.s32.totalorder %s1460_s10, %s1258_s26 }
  0x20   : > { %p1255_p8 = pnand %p1253_p6, %p1239_p11  ;;  %p1261_p0 = scmp.lt.s32.totalorder %s1259_s29, %s1252_s24 }
  0x22   : > { %p1256_p10 = pneg %p1255_p8  ;;  %p1262_p1 = por %p1261_p0, %p1260_p12 }
  0x24   : > { %p1263_p2 = pnand %p1262_p1, %p1256_p10 }
  0x26   : > { %1266 = shalt.err (!%p1263_p2)
}
  0x27   : > { %s1360_s30 = smov 128   ;;  %s1361_s5 = smov 8  }
  0x28   : > { %1130 = dma.hbm_to_vmem [thread:$0]  (!%p1456_p9), %s1452_s8, 1024, %s1460_s10, %s1462_s12, %s1360_s30, %s1360_s30, %s1361_s5  }
  0x29   : > { %p1087_p11 = scmp.ge.s32.totalorder %s1337_s22, 1  ;;  %p171_p13 = scmp.lt.s32.totalorder %s1337_s22, 3 }
  0x2b   : > { %p172_p3 = pnand %p1087_p11, %p171_p13 }
  0x2d   : > { %175 = sbr.rel (%p172_p3) target bundleno = 996 (0x3e4), region = 32 }
  0x34   : > { %s177_s6 = sand.u32 1, %s1321_s18  }
  0x35   : > { %s1493_s7 = sshll.u32 %s177_s6, 6  ;;  %s178_s9 = scalar_lea.sflag [#allocation6], %s177_s6 }
  0x36   : > { %s181_s13 = scalar_lea.vmem [#allocation5], %s1493_s7 }
  0x37   : > { %1312 = dma.done.wait (%p1439_p7), %s178_s9, 1024  }
  0x38   : > { %1314 = vsyncadd (%p1439_p7), %s178_s9, 4294966272  ;;  %vm210_vm0 = vcmask 7168   ;;  %v1362_v0 = vmov 0.0   ;;  %v1363_v1 = vmov 0   ;;  %v1364_v2 = vmov 1   ;;  %v217_v3 = vld [vmem:[%s1929_s2 + $0x10] sm:$0xff] }
  0x39   : > { %211 = vst.msk [vmem:[#allocation2] sm:$0xff] %vm210_vm0, %v1362_v0  ;;  %212 = vst.msk [vmem:[#allocation2 + $0x8] sm:$0xff] %vm210_vm0, %v1362_v0  ;;  %1228 = vset.pattern.permute.xlu1 %v1363_v1  ;;  %1229 = vset.pattern.permute.xlu0 %v1364_v2  ;;  %v215_v4 = vld [vmem:[%s1929_s2] sm:$0xff]  ;;  %v218_v5 = vld [vmem:[%s1929_s2 + $0x18] sm:$0xff]  ;;  %v1365_v7 = vmov 2   ;;  %v1366_v8 = vmov 3  }
  0x3a   : > { %213 = vst.msk [vmem:[#allocation2 + $0x10] sm:$0xff] %vm210_vm0, %v1362_v0  ;;  %214 = vst.msk [vmem:[#allocation2 + $0x18] sm:$0xff] %vm210_vm0, %v1362_v0  ;;  %231 = vperm.xlu1 %1228, %v217_v3   ;;  %240 = vperm.xlu0 %1229, %v215_v4   ;;  %v216_v6 = vld [vmem:[%s1929_s2 + $0x8] sm:$0xff]  ;;  %v287_v10 = vld [vmem:[%s1930_s3] sm:$0xff]  ;;  %p203_p7 = scmp.lt.s32.totalorder %s1329_s20, 1  ;;  %v1576_v33 = vmov 0.0  }
  0x3b   : > { %v288_v9 = vld [vmem:[%s1930_s3 + $0x8] sm:$0xff]  ;;  %v289_v11 = vld [vmem:[%s1930_s3 + $0x10] sm:$0xff]  ;;  %v290_v12 = vld [vmem:[%s1930_s3 + $0x18] sm:$0xff]  ;;  %v1578_v34 = vmov 0.0   ;;  %v1580_v35 = vmov 0.0   ;;  %v1582_v36 = vmov 0.0  }
  0x3c   : > { %s1958_s20 = smov (!%p203_p7, %s1329_s20), 1  ;;  %s1584_s10 = smov 0  }
  0x3d   : > { %s205_s8 = scalar_lea.vmem %s1931_s4, %s1958_s20 }
  0x3e   : > { %236 = vperm.xlu1 %1228, %v218_v5   ;;  %252 = vperm.xlu0 %1229, %v218_v5  }
  0x42   : > { %1230 = vset.pattern.permute.xlu1 %v1364_v2  ;;  %1232 = vset.pattern.permute.xlu0 %v1365_v7 }
  0x43   : > { %244 = vperm.xlu1 %1230, %v216_v6   ;;  %260 = vperm.xlu0 %1232, %v216_v6  }
  0x47   : > { %248 = vperm.xlu1 %1230, %v217_v3   ;;  %1233 = vset.pattern.permute.xlu0 %v1366_v8 }
  0x48   : > { %272 = vperm.xlu0 %1233, %v215_v4  }
  0x4b   : > { %1231 = vset.pattern.permute.xlu1 %v1365_v7 }
  0x4c   : > { %256 = vperm.xlu1 %1231, %v215_v4   ;;  %284 = vperm.xlu0 %1233, %v218_v5  }
  0x50   : > { %264 = vperm.xlu1 %1231, %v217_v3   ;;  %1235 = vset.pattern.permute.xlu0 %v1363_v1 }
  0x51   : > { %221 = vperm.xlu0 %1235, %v215_v4  }
  0x54   : > { %268 = vperm.xlu1 %1231, %v218_v5  }
  0x55   : > { %226 = vperm.xlu0 %1235, %v216_v6  }
  0x58   : > { %1234 = vset.pattern.permute.xlu1 %v1366_v8 }
  0x59   : > { %276 = vperm.xlu1 %1234, %v216_v6   ;;  %298 = vperm.xlu0 %1235, %v288_v9  }
  0x5d   : > { %280 = vperm.xlu1 %1234, %v217_v3  }
  0x61   : > { %1236 = vset.pattern.permute.xlu1 %v1363_v1 }
  0x62   : > { %293 = vperm.xlu1 %1236, %v287_v10  }
  0x66   : > { %303 = vperm.xlu1 %1236, %v289_v11  }
  0x6a   : > { %308 = vperm.xlu1 %1236, %v290_v12  }
  0xb9   : > { %v1536_v13 = vpop.permute.xlu1 %231  ;;  %v1538_v14 = vpop.permute.xlu0 %240 }
  0xbd   : > { %v1540_v15 = vpop.permute.xlu1 %236  ;;  %v1542_v16 = vpop.permute.xlu0 %252 }
  0xc2   : > { %v1544_v17 = vpop.permute.xlu1 %244  ;;  %v1546_v18 = vpop.permute.xlu0 %260 }
  0xc6   : > { %v1548_v19 = vpop.permute.xlu1 %248 }
  0xc7   : > { %v1550_v20 = vpop.permute.xlu0 %272 }
  0xcb   : > { %v1552_v21 = vpop.permute.xlu1 %256  ;;  %v1554_v22 = vpop.permute.xlu0 %284 }
  0xcf   : > { %v1556_v23 = vpop.permute.xlu1 %264 }
  0xd0   : > { %v1558_v24 = vpop.permute.xlu0 %221 }
  0xd3   : > { %v1560_v25 = vpop.permute.xlu1 %268 }
  0xd4   : > { %v1562_v26 = vpop.permute.xlu0 %226 }
  0xd8   : > { %v1564_v27 = vpop.permute.xlu1 %276  ;;  %v1566_v28 = vpop.permute.xlu0 %298 }
  0xdc   : > { %v1568_v29 = vpop.permute.xlu1 %280 }
  0xe1   : > { %v1570_v30 = vpop.permute.xlu1 %293 }
  0xe5   : > { %v1572_v31 = vpop.permute.xlu1 %303 }
  0xe9   : > { %v1574_v32 = vpop.permute.xlu1 %308 }
  0xea LB: >> { %s1089_s27 = sshll.u32 %s1357_s10, 3  ;;  %v1932_v37 = vlaneseq  ;;  %s316_s10 = sadd.s32 1, %s1357_s10   ;;  %s1357_s10 = sphi %s1584_s10, %s316_s10   ;;  %v1353_v36 = vphi %v1582_v36, %v1947_v36   ;;  %v1349_v35 = vphi %v1580_v35, %v1946_v35   ;;  %v1345_v34 = vphi %v1578_v34, %v1945_v34   ;;  %v1341_v33 = vphi %v1576_v33, %v1944_v33  }
  0xeb   : >> { %s322_s11 = scalar_lea.vmem %s181_s13, %s1089_s27 [#allocation5]  ;;  %p313_p9 = scmp.ge.s32.totalorder %s316_s10, 2  }
  0xec   : >> { %v1605_v38 = vshrl.u32 %v1932_v37, 7  ;;  %v1607_v39 = vld [vmem:[%s322_s11] sm:$0xff]  ;;  %v1609_v40 = vld [vmem:[%s322_s11 + $0x10] sm:$0xff]  ;;  %s1875_s12 = sld [smem:[#allocation4]] (%p313_p9) }
  0xed   : >> { %v1611_v41 = vld [vmem:[%s322_s11 + $0x20] sm:$0xff]  ;;  %v1613_v42 = vld [vmem:[%s322_s11 + $0x30] sm:$0xff] }
  0xee   : >> { %1939 = vst [vmem:[#allocation8_spill] sm:$0xff] %v1605_v38  ;;  %v329_v43 = vsub.s32 0, %v1605_v38  ;;  %v385_v44 = vsub.s32 1, %v1605_v38  ;;  %v1618_v45 = vsub.s32 2, %v1605_v38  ;;  %v1621_v46 = vsub.s32 3, %v1605_v38 }
  0xef   : >> { %v1626_v49 = vsub.s32 4, %v1605_v38  ;;  %v1629_v50 = vsub.s32 5, %v1605_v38 }
  0xf0   : >> { %v330_v47 = vrot.slane %v1607_v39, %v329_v43  ;;  %v342_v48 = vrot.slane %v1609_v40, %v329_v43  ;;  %v354_v51 = vrot.slane %v1611_v41, %v329_v43  ;;  %v366_v52 = vrot.slane %v1613_v42, %v329_v43 }
  0xf1   : >> { %v386_v53 = vrot.slane %v1607_v39, %v385_v44  ;;  %v398_v54 = vrot.slane %v1609_v40, %v385_v44 }
  0xf2   : >> { %v331_v55 = vmul.f32 %v330_v47, %v1558_v24  ;;  %v332_v56 = vmul.f32 %v330_v47, %v1562_v26  ;;  %v333_v57 = vmul.f32 %v330_v47, %v1536_v13  ;;  %v334_v58 = vmul.f32 %v330_v47, %v1540_v15  ;;  %p1090_p4 = scmp.eq.s32.totalorder (%p313_p9), %s1875_s12, 0 }
  0xf3   : >> { %v343_v59 = vmul.f32 %v342_v48, %v1538_v14  ;;  %v344_v60 = vmul.f32 %v342_v48, %v1544_v17  ;;  %v345_v61 = vmul.f32 %v342_v48, %v1548_v19  ;;  %v346_v62 = vmul.f32 %v342_v48, %v1542_v16 }
  0xf4   : >> { %v335_v63 = vadd.f32 %v331_v55, %v1570_v30  ;;  %v336_v0 = vadd.f32 %v332_v56, %v1566_v28  ;;  %v337_v1 = vadd.f32 %v333_v57, %v1572_v31  ;;  %v338_v2 = vadd.f32 %v334_v58, %v1574_v32 }
  0xf5   : >> { %v355_v3 = vmul.f32 %v354_v51, %v1552_v21  ;;  %v356_v4 = vmul.f32 %v354_v51, %v1546_v18  ;;  %v357_v5 = vmul.f32 %v354_v51, %v1556_v23  ;;  %v358_v6 = vmul.f32 %v354_v51, %v1560_v25 }
  0xf6   : >> { %v347_v7 = vadd.f32 %v343_v59, %v335_v63  ;;  %v348_v8 = vadd.f32 %v344_v60, %v336_v0  ;;  %v349_v9 = vadd.f32 %v345_v61, %v337_v1  ;;  %v350_v10 = vadd.f32 %v346_v62, %v338_v2 }
  0xf7   : >> { %v367_v11 = vmul.f32 %v366_v52, %v1550_v20  ;;  %v368_v12 = vmul.f32 %v366_v52, %v1564_v27  ;;  %v369_v43 = vmul.f32 %v366_v52, %v1568_v29  ;;  %v370_v47 = vmul.f32 %v366_v52, %v1554_v22 }
  0xf8   : >> { %v359_v48 = vadd.f32 %v355_v3, %v347_v7  ;;  %v360_v55 = vadd.f32 %v356_v4, %v348_v8  ;;  %v361_v56 = vadd.f32 %v357_v5, %v349_v9  ;;  %v362_v57 = vadd.f32 %v358_v6, %v350_v10 }
  0xf9   : >> { %v387_v58 = vmul.f32 %v386_v53, %v1558_v24  ;;  %v388_v51 = vmul.f32 %v386_v53, %v1562_v26  ;;  %v389_v59 = vmul.f32 %v386_v53, %v1536_v13  ;;  %v390_v60 = vmul.f32 %v386_v53, %v1540_v15 }
  0xfa   : >> { %v371_v61 = vadd.f32 %v367_v11, %v359_v48  ;;  %v372_v62 = vadd.f32 %v368_v12, %v360_v55  ;;  %v373_v63 = vadd.f32 %v369_v43, %v361_v56  ;;  %v374_v0 = vadd.f32 %v370_v47, %v362_v57 }
  0xfb   : >> { %v391_v1 = vadd.f32 %v387_v58, %v1570_v30  ;;  %v392_v52 = vadd.f32 %v388_v51, %v1566_v28  ;;  %v393_v2 = vadd.f32 %v389_v59, %v1572_v31  ;;  %v394_v3 = vadd.f32 %v390_v60, %v1574_v32 }
  0xfc   : >> { %v410_v4 = vrot.slane %v1611_v41, %v385_v44  ;;  %v422_v5 = vrot.slane %v1613_v42, %v385_v44  ;;  %v1666_v6 = vsub.s32 6, %v1605_v38  ;;  %v1669_v53 = vsub.s32 7, %v1605_v38 }
  0xfd   : >> { %v399_v7 = vmul.f32 %v398_v54, %v1538_v14  ;;  %v400_v8 = vmul.f32 %v398_v54, %v1544_v17  ;;  %v401_v9 = vmul.f32 %v398_v54, %v1548_v19  ;;  %v402_v10 = vmul.f32 %v398_v54, %v1542_v16 }
  0xfe   : >> { %1940 = vst [vmem:[#allocation9_spill] sm:$0xff] %v1669_v53  ;;  %v375_v11 = vmax.f32 %v371_v61, 0.0  ;;  %v376_v12 = vmax.f32 %v372_v62, 0.0  ;;  %v377_v43 = vmax.f32 %v373_v63, 0.0  ;;  %v378_v47 = vmax.f32 %v374_v0, 0.0 }
  0xff   : >> { %v403_v48 = vadd.f32 %v399_v7, %v391_v1  ;;  %v404_v44 = vadd.f32 %v400_v8, %v392_v52  ;;  %v405_v55 = vadd.f32 %v401_v9, %v393_v2  ;;  %v406_v56 = vadd.f32 %v402_v10, %v394_v3 }
 0x100   : >> { %v411_v57 = vmul.f32 %v410_v4, %v1552_v21  ;;  %v412_v58 = vmul.f32 %v410_v4, %v1546_v18  ;;  %v413_v51 = vmul.f32 %v410_v4, %v1556_v23  ;;  %v414_v59 = vmul.f32 %v410_v4, %v1560_v25 }
 0x101   : >> { %v423_v60 = vmul.f32 %v422_v5, %v1550_v20  ;;  %v424_v54 = vmul.f32 %v422_v5, %v1564_v27  ;;  %v425_v61 = vmul.f32 %v422_v5, %v1568_v29  ;;  %v426_v62 = vmul.f32 %v422_v5, %v1554_v22 }
 0x102   : >> { %v415_v63 = vadd.f32 %v411_v57, %v403_v48  ;;  %v416_v0 = vadd.f32 %v412_v58, %v404_v44  ;;  %v417_v1 = vadd.f32 %v413_v51, %v405_v55  ;;  %v418_v52 = vadd.f32 %v414_v59, %v406_v56 }
 0x103   : >> { %v379_v2 = vadd.f32 %v1353_v36, %v375_v11  ;;  %v380_v3 = vadd.f32 %v1349_v35, %v376_v12  ;;  %v442_v7 = vrot.slane %v1607_v39, %v1618_v45  ;;  %v454_v4 = vrot.slane %v1609_v40, %v1618_v45 }
 0x104   : >> { %v427_v8 = vadd.f32 %v423_v60, %v415_v63  ;;  %v428_v9 = vadd.f32 %v424_v54, %v416_v0  ;;  %v429_v10 = vadd.f32 %v425_v61, %v417_v1  ;;  %v430_v37 = vadd.f32 %v426_v62, %v418_v52 }
 0x105   : >> { %v443_v5 = vmul.f32 %v442_v7, %v1558_v24  ;;  %v444_v48 = vmul.f32 %v442_v7, %v1562_v26  ;;  %v445_v44 = vmul.f32 %v442_v7, %v1536_v13  ;;  %v446_v36 = vmul.f32 %v442_v7, %v1540_v15 }
 0x106   : >> { %v381_v35 = vadd.f32 %v1345_v34, %v377_v43  ;;  %v382_v11 = vadd.f32 %v1341_v33, %v378_v47  ;;  %v466_v12 = vrot.slane %v1611_v41, %v1618_v45  ;;  %v478_v55 = vrot.slane %v1613_v42, %v1618_v45 }
 0x107   : >> { %v447_v56 = vadd.f32 %v443_v5, %v1570_v30  ;;  %v448_v57 = vadd.f32 %v444_v48, %v1566_v28  ;;  %v449_v58 = vadd.f32 %v445_v44, %v1572_v31  ;;  %v450_v51 = vadd.f32 %v446_v36, %v1574_v32 }
 0x108   : >> { %v431_v59 = vmax.f32 %v427_v8, 0.0  ;;  %v432_v60 = vmax.f32 %v428_v9, 0.0  ;;  %v433_v54 = vmax.f32 %v429_v10, 0.0  ;;  %v434_v34 = vmax.f32 %v430_v37, 0.0 }
 0x109   : >> { %v455_v33 = vmul.f32 %v454_v4, %v1538_v14  ;;  %v456_v43 = vmul.f32 %v454_v4, %v1544_v17  ;;  %v457_v47 = vmul.f32 %v454_v4, %v1548_v19  ;;  %v458_v45 = vmul.f32 %v454_v4, %v1542_v16 }
 0x10a   : >> { %v467_v61 = vmul.f32 %v466_v12, %v1552_v21  ;;  %v468_v62 = vmul.f32 %v466_v12, %v1546_v18  ;;  %v469_v63 = vmul.f32 %v466_v12, %v1556_v23  ;;  %v470_v0 = vmul.f32 %v466_v12, %v1560_v25 }
 0x10b   : >> { %v459_v1 = vadd.f32 %v455_v33, %v447_v56  ;;  %v460_v52 = vadd.f32 %v456_v43, %v448_v57  ;;  %v461_v7 = vadd.f32 %v457_v47, %v449_v58  ;;  %v462_v37 = vadd.f32 %v458_v45, %v450_v51 }
 0x10c   : >> { %v479_v8 = vmul.f32 %v478_v55, %v1550_v20  ;;  %v480_v9 = vmul.f32 %v478_v55, %v1564_v27  ;;  %v481_v10 = vmul.f32 %v478_v55, %v1568_v29  ;;  %v482_v4 = vmul.f32 %v478_v55, %v1554_v22 }
 0x10d   : >> { %v471_v5 = vadd.f32 %v467_v61, %v459_v1  ;;  %v472_v48 = vadd.f32 %v468_v62, %v460_v52  ;;  %v473_v44 = vadd.f32 %v469_v63, %v461_v7  ;;  %v474_v36 = vadd.f32 %v470_v0, %v462_v37 }
 0x10e   : >> { %v435_v38 = vadd.f32 %v431_v59, %v379_v2  ;;  %v436_v53 = vadd.f32 %v432_v60, %v380_v3  ;;  %v498_v12 = vrot.slane %v1607_v39, %v1621_v46  ;;  %v510_v56 = vrot.slane %v1609_v40, %v1621_v46 }
 0x10f   : >> { %v483_v57 = vadd.f32 %v479_v8, %v471_v5  ;;  %v484_v58 = vadd.f32 %v480_v9, %v472_v48  ;;  %v485_v51 = vadd.f32 %v481_v10, %v473_v44  ;;  %v486_v33 = vadd.f32 %v482_v4, %v474_v36 }
 0x110   : >> { %v499_v43 = vmul.f32 %v498_v12, %v1558_v24  ;;  %v500_v55 = vmul.f32 %v498_v12, %v1562_v26  ;;  %v501_v47 = vmul.f32 %v498_v12, %v1536_v13  ;;  %v502_v45 = vmul.f32 %v498_v12, %v1540_v15 }
 0x111   : >> { %v437_v2 = vadd.f32 %v433_v54, %v381_v35  ;;  %v438_v3 = vadd.f32 %v434_v34, %v382_v11  ;;  %v522_v59 = vrot.slane %v1611_v41, %v1621_v46  ;;  %v534_v60 = vrot.slane %v1613_v42, %v1621_v46 }
 0x112   : >> { %v503_v61 = vadd.f32 %v499_v43, %v1570_v30  ;;  %v504_v62 = vadd.f32 %v500_v55, %v1566_v28  ;;  %v505_v63 = vadd.f32 %v501_v47, %v1572_v31  ;;  %v506_v0 = vadd.f32 %v502_v45, %v1574_v32 }
 0x113   : >> { %v487_v1 = vmax.f32 %v483_v57, 0.0  ;;  %v488_v52 = vmax.f32 %v484_v58, 0.0  ;;  %v489_v7 = vmax.f32 %v485_v51, 0.0  ;;  %v490_v37 = vmax.f32 %v486_v33, 0.0 }
 0x114   : >> { %v511_v35 = vmul.f32 %v510_v56, %v1538_v14  ;;  %v512_v11 = vmul.f32 %v510_v56, %v1544_v17  ;;  %v513_v54 = vmul.f32 %v510_v56, %v1548_v19  ;;  %v514_v46 = vmul.f32 %v510_v56, %v1542_v16 }
 0x115   : >> { %v523_v34 = vmul.f32 %v522_v59, %v1552_v21  ;;  %v524_v8 = vmul.f32 %v522_v59, %v1546_v18  ;;  %v525_v9 = vmul.f32 %v522_v59, %v1556_v23  ;;  %v526_v10 = vmul.f32 %v522_v59, %v1560_v25 }
 0x116   : >> { %v515_v4 = vadd.f32 %v511_v35, %v503_v61  ;;  %v516_v5 = vadd.f32 %v512_v11, %v504_v62  ;;  %v517_v48 = vadd.f32 %v513_v54, %v505_v63  ;;  %v518_v44 = vadd.f32 %v514_v46, %v506_v0 }
 0x117   : >> { %v535_v36 = vmul.f32 %v534_v60, %v1550_v20  ;;  %v536_v12 = vmul.f32 %v534_v60, %v1564_v27  ;;  %v537_v57 = vmul.f32 %v534_v60, %v1568_v29  ;;  %v538_v56 = vmul.f32 %v534_v60, %v1554_v22 }
 0x118   : >> { %v527_v58 = vadd.f32 %v523_v34, %v515_v4  ;;  %v528_v51 = vadd.f32 %v524_v8, %v516_v5  ;;  %v529_v33 = vadd.f32 %v525_v9, %v517_v48  ;;  %v530_v43 = vadd.f32 %v526_v10, %v518_v44 }
 0x119   : >> { %v491_v55 = vadd.f32 %v487_v1, %v435_v38  ;;  %v492_v47 = vadd.f32 %v488_v52, %v436_v53  ;;  %v554_v45 = vrot.slane %v1607_v39, %v1626_v49  ;;  %v566_v59 = vrot.slane %v1609_v40, %v1626_v49 }
 0x11a   : >> { %v539_v61 = vadd.f32 %v535_v36, %v527_v58  ;;  %v540_v62 = vadd.f32 %v536_v12, %v528_v51  ;;  %v541_v63 = vadd.f32 %v537_v57, %v529_v33  ;;  %v542_v0 = vadd.f32 %v538_v56, %v530_v43 }
 0x11b   : >> { %v555_v35 = vmul.f32 %v554_v45, %v1558_v24  ;;  %v556_v60 = vmul.f32 %v554_v45, %v1562_v26  ;;  %v557_v11 = vmul.f32 %v554_v45, %v1536_v13  ;;  %v558_v54 = vmul.f32 %v554_v45, %v1540_v15 }
 0x11c   : >> { %v493_v38 = vadd.f32 %v489_v7, %v437_v2  ;;  %v494_v53 = vadd.f32 %v490_v37, %v438_v3  ;;  %v578_v1 = vrot.slane %v1611_v41, %v1626_v49  ;;  %v590_v52 = vrot.slane %v1613_v42, %v1626_v49 }
 0x11d   : >> { %v559_v46 = vadd.f32 %v555_v35, %v1570_v30  ;;  %v560_v34 = vadd.f32 %v556_v60, %v1566_v28  ;;  %v561_v8 = vadd.f32 %v557_v11, %v1572_v31  ;;  %v562_v9 = vadd.f32 %v558_v54, %v1574_v32 }
 0x11e   : >> { %v543_v10 = vmax.f32 %v539_v61, 0.0  ;;  %v544_v4 = vmax.f32 %v540_v62, 0.0  ;;  %v545_v5 = vmax.f32 %v541_v63, 0.0  ;;  %v546_v48 = vmax.f32 %v542_v0, 0.0 }
 0x11f   : >> { %v567_v2 = vmul.f32 %v566_v59, %v1538_v14  ;;  %v568_v3 = vmul.f32 %v566_v59, %v1544_v17  ;;  %v569_v7 = vmul.f32 %v566_v59, %v1548_v19  ;;  %v570_v49 = vmul.f32 %v566_v59, %v1542_v16 }
 0x120   : >> { %v579_v37 = vmul.f32 %v578_v1, %v1552_v21  ;;  %v580_v44 = vmul.f32 %v578_v1, %v1546_v18  ;;  %v581_v36 = vmul.f32 %v578_v1, %v1556_v23  ;;  %v582_v12 = vmul.f32 %v578_v1, %v1560_v25 }
 0x121   : >> { %v571_v57 = vadd.f32 %v567_v2, %v559_v46  ;;  %v572_v56 = vadd.f32 %v568_v3, %v560_v34  ;;  %v573_v58 = vadd.f32 %v569_v7, %v561_v8  ;;  %v574_v51 = vadd.f32 %v570_v49, %v562_v9 }
 0x122   : >> { %v591_v33 = vmul.f32 %v590_v52, %v1550_v20  ;;  %v592_v43 = vmul.f32 %v590_v52, %v1564_v27  ;;  %v593_v45 = vmul.f32 %v590_v52, %v1568_v29  ;;  %v594_v59 = vmul.f32 %v590_v52, %v1554_v22 }
 0x123   : >> { %v583_v61 = vadd.f32 %v579_v37, %v571_v57  ;;  %v584_v62 = vadd.f32 %v580_v44, %v572_v56  ;;  %v585_v63 = vadd.f32 %v581_v36, %v573_v58  ;;  %v586_v0 = vadd.f32 %v582_v12, %v574_v51 }
 0x124   : >> { %v547_v35 = vadd.f32 %v543_v10, %v491_v55  ;;  %v548_v60 = vadd.f32 %v544_v4, %v492_v47  ;;  %v610_v11 = vrot.slane %v1607_v39, %v1629_v50  ;;  %v622_v54 = vrot.slane %v1609_v40, %v1629_v50 }
 0x125   : >> { %v595_v1 = vadd.f32 %v591_v33, %v583_v61  ;;  %v596_v46 = vadd.f32 %v592_v43, %v584_v62  ;;  %v597_v34 = vadd.f32 %v593_v45, %v585_v63  ;;  %v598_v8 = vadd.f32 %v594_v59, %v586_v0 }
 0x126   : >> { %v611_v9 = vmul.f32 %v610_v11, %v1558_v24  ;;  %v612_v52 = vmul.f32 %v610_v11, %v1562_v26  ;;  %v613_v2 = vmul.f32 %v610_v11, %v1536_v13  ;;  %v614_v3 = vmul.f32 %v610_v11, %v1540_v15 }
 0x127   : >> { %v549_v55 = vadd.f32 %v545_v5, %v493_v38  ;;  %v550_v47 = vadd.f32 %v546_v48, %v494_v53  ;;  %v634_v10 = vrot.slane %v1611_v41, %v1629_v50  ;;  %v646_v4 = vrot.slane %v1613_v42, %v1629_v50 }
 0x128   : >> { %v615_v7 = vadd.f32 %v611_v9, %v1570_v30  ;;  %v616_v49 = vadd.f32 %v612_v52, %v1566_v28  ;;  %v617_v37 = vadd.f32 %v613_v2, %v1572_v31  ;;  %v618_v44 = vadd.f32 %v614_v3, %v1574_v32 }
 0x129   : >> { %v599_v36 = vmax.f32 %v595_v1, 0.0  ;;  %v600_v12 = vmax.f32 %v596_v46, 0.0  ;;  %v601_v57 = vmax.f32 %v597_v34, 0.0  ;;  %v602_v56 = vmax.f32 %v598_v8, 0.0 }
 0x12a   : >> { %v623_v38 = vmul.f32 %v622_v54, %v1538_v14  ;;  %v624_v53 = vmul.f32 %v622_v54, %v1544_v17  ;;  %v625_v5 = vmul.f32 %v622_v54, %v1548_v19  ;;  %v626_v50 = vmul.f32 %v622_v54, %v1542_v16 }
 0x12b   : >> { %v635_v48 = vmul.f32 %v634_v10, %v1552_v21  ;;  %v636_v58 = vmul.f32 %v634_v10, %v1546_v18  ;;  %v637_v51 = vmul.f32 %v634_v10, %v1556_v23  ;;  %v638_v33 = vmul.f32 %v634_v10, %v1560_v25 }
 0x12c   : >> { %v627_v43 = vadd.f32 %v623_v38, %v615_v7  ;;  %v628_v45 = vadd.f32 %v624_v53, %v616_v49  ;;  %v629_v59 = vadd.f32 %v625_v5, %v617_v37  ;;  %v630_v61 = vadd.f32 %v626_v50, %v618_v44 }
 0x12d   : >> { %v647_v62 = vmul.f32 %v646_v4, %v1550_v20  ;;  %v648_v63 = vmul.f32 %v646_v4, %v1564_v27  ;;  %v649_v0 = vmul.f32 %v646_v4, %v1568_v29  ;;  %v650_v11 = vmul.f32 %v646_v4, %v1554_v22 }
 0x12e   : >> { %v639_v54 = vadd.f32 %v635_v48, %v627_v43  ;;  %v640_v1 = vadd.f32 %v636_v58, %v628_v45  ;;  %v641_v46 = vadd.f32 %v637_v51, %v629_v59  ;;  %v642_v34 = vadd.f32 %v638_v33, %v630_v61 }
 0x12f   : >> { %v603_v8 = vadd.f32 %v599_v36, %v547_v35  ;;  %v604_v9 = vadd.f32 %v600_v12, %v548_v60  ;;  %v666_v52 = vrot.slane %v1607_v39, %v1666_v6  ;;  %v678_v2 = vrot.slane %v1609_v40, %v1666_v6 }
 0x130   : >> { %v651_v3 = vadd.f32 %v647_v62, %v639_v54  ;;  %v652_v10 = vadd.f32 %v648_v63, %v640_v1  ;;  %v653_v7 = vadd.f32 %v649_v0, %v641_v46  ;;  %v654_v49 = vadd.f32 %v650_v11, %v642_v34 }
 0x131   : >> { %v667_v37 = vmul.f32 %v666_v52, %v1558_v24  ;;  %v668_v4 = vmul.f32 %v666_v52, %v1562_v26  ;;  %v669_v44 = vmul.f32 %v666_v52, %v1536_v13  ;;  %v670_v38 = vmul.f32 %v666_v52, %v1540_v15 }
 0x132   : >> { %v605_v35 = vadd.f32 %v601_v57, %v549_v55  ;;  %v606_v60 = vadd.f32 %v602_v56, %v550_v47  ;;  %v690_v36 = vrot.slane %v1611_v41, %v1666_v6  ;;  %v702_v12 = vrot.slane %v1613_v42, %v1666_v6 }
 0x133   : >> { %v671_v53 = vadd.f32 %v667_v37, %v1570_v30  ;;  %v672_v5 = vadd.f32 %v668_v4, %v1566_v28  ;;  %v673_v50 = vadd.f32 %v669_v44, %v1572_v31  ;;  %v674_v48 = vadd.f32 %v670_v38, %v1574_v32  ;;  %v1941_v37 = vld [vmem:[#allocation9_spill] sm:$0xff] }
 0x134   : >> { %v655_v58 = vmax.f32 %v651_v3, 0.0  ;;  %v656_v51 = vmax.f32 %v652_v10, 0.0  ;;  %v657_v33 = vmax.f32 %v653_v7, 0.0  ;;  %v658_v43 = vmax.f32 %v654_v49, 0.0 }
 0x135   : >> { %v679_v55 = vmul.f32 %v678_v2, %v1538_v14  ;;  %v680_v47 = vmul.f32 %v678_v2, %v1544_v17  ;;  %v681_v57 = vmul.f32 %v678_v2, %v1548_v19  ;;  %v682_v6 = vmul.f32 %v678_v2, %v1542_v16 }
 0x136   : >> { %v691_v56 = vmul.f32 %v690_v36, %v1552_v21  ;;  %v692_v45 = vmul.f32 %v690_v36, %v1546_v18  ;;  %v693_v59 = vmul.f32 %v690_v36, %v1556_v23  ;;  %v694_v61 = vmul.f32 %v690_v36, %v1560_v25 }
 0x137   : >> { %v683_v62 = vadd.f32 %v679_v55, %v671_v53  ;;  %v684_v63 = vadd.f32 %v680_v47, %v672_v5  ;;  %v685_v0 = vadd.f32 %v681_v57, %v673_v50  ;;  %v686_v11 = vadd.f32 %v682_v6, %v674_v48 }
 0x138   : >> { %v703_v54 = vmul.f32 %v702_v12, %v1550_v20  ;;  %v704_v1 = vmul.f32 %v702_v12, %v1564_v27  ;;  %v705_v46 = vmul.f32 %v702_v12, %v1568_v29  ;;  %v706_v34 = vmul.f32 %v702_v12, %v1554_v22 }
 0x139   : >> { %v695_v52 = vadd.f32 %v691_v56, %v683_v62  ;;  %v696_v2 = vadd.f32 %v692_v45, %v684_v63  ;;  %v697_v3 = vadd.f32 %v693_v59, %v685_v0  ;;  %v698_v10 = vadd.f32 %v694_v61, %v686_v11 }
 0x13a   : >> { %v659_v7 = vadd.f32 %v655_v58, %v603_v8  ;;  %v660_v49 = vadd.f32 %v656_v51, %v604_v9  ;;  %v722_v4 = vrot.slane %v1607_v39, %v1941_v37  ;;  %v734_v44 = vrot.slane %v1609_v40, %v1941_v37 }
 0x13b   : >> { %v707_v38 = vadd.f32 %v703_v54, %v695_v52  ;;  %v708_v36 = vadd.f32 %v704_v1, %v696_v2  ;;  %v709_v53 = vadd.f32 %v705_v46, %v697_v3  ;;  %v710_v5 = vadd.f32 %v706_v34, %v698_v10 }
 0x13c   : >> { %v723_v50 = vmul.f32 %v722_v4, %v1558_v24  ;;  %v724_v12 = vmul.f32 %v722_v4, %v1562_v26  ;;  %v725_v48 = vmul.f32 %v722_v4, %v1536_v13  ;;  %v726_v55 = vmul.f32 %v722_v4, %v1540_v15 }
 0x13d   : >> { %v661_v8 = vadd.f32 %v657_v33, %v605_v35  ;;  %v662_v9 = vadd.f32 %v658_v43, %v606_v60  ;;  %v746_v39 = vrot.slane %v1611_v41, %v1941_v37  ;;  %v758_v40 = vrot.slane %v1613_v42, %v1941_v37 }
 0x13e   : >> { %v727_v58 = vadd.f32 %v723_v50, %v1570_v30  ;;  %v728_v51 = vadd.f32 %v724_v12, %v1566_v28  ;;  %v729_v47 = vadd.f32 %v725_v48, %v1572_v31  ;;  %v730_v57 = vadd.f32 %v726_v55, %v1574_v32 }
 0x13f   : >> { %v711_v6 = vmax.f32 %v707_v38, 0.0  ;;  %v712_v56 = vmax.f32 %v708_v36, 0.0  ;;  %v713_v45 = vmax.f32 %v709_v53, 0.0  ;;  %v714_v59 = vmax.f32 %v710_v5, 0.0 }
 0x140   : >> { %v735_v35 = vmul.f32 %v734_v44, %v1538_v14  ;;  %v736_v60 = vmul.f32 %v734_v44, %v1544_v17  ;;  %v737_v41 = vmul.f32 %v734_v44, %v1548_v19  ;;  %v738_v42 = vmul.f32 %v734_v44, %v1542_v16 }
 0x141   : >> { %v747_v33 = vmul.f32 %v746_v39, %v1552_v21  ;;  %v748_v43 = vmul.f32 %v746_v39, %v1546_v18  ;;  %v749_v61 = vmul.f32 %v746_v39, %v1556_v23  ;;  %v750_v62 = vmul.f32 %v746_v39, %v1560_v25 }
 0x142   : >> { %v739_v63 = vadd.f32 %v735_v35, %v727_v58  ;;  %v740_v0 = vadd.f32 %v736_v60, %v728_v51  ;;  %v741_v11 = vadd.f32 %v737_v41, %v729_v47  ;;  %v742_v54 = vadd.f32 %v738_v42, %v730_v57 }
 0x143   : >> { %v759_v1 = vmul.f32 %v758_v40, %v1550_v20  ;;  %v760_v46 = vmul.f32 %v758_v40, %v1564_v27  ;;  %v761_v34 = vmul.f32 %v758_v40, %v1568_v29  ;;  %v762_v52 = vmul.f32 %v758_v40, %v1554_v22 }
 0x144   : >> { %v751_v2 = vadd.f32 %v747_v33, %v739_v63  ;;  %v752_v3 = vadd.f32 %v748_v43, %v740_v0  ;;  %v753_v10 = vadd.f32 %v749_v61, %v741_v11  ;;  %v754_v37 = vadd.f32 %v750_v62, %v742_v54 }
 0x145   : >> { %v715_v4 = vadd.f32 %v711_v6, %v659_v7  ;;  %v716_v44 = vadd.f32 %v712_v56, %v660_v49  ;;  %v717_v38 = vadd.f32 %v713_v45, %v661_v8  ;;  %v718_v36 = vadd.f32 %v714_v59, %v662_v9 }
 0x146   : >> { %v763_v53 = vadd.f32 %v759_v1, %v751_v2  ;;  %v764_v5 = vadd.f32 %v760_v46, %v752_v3  ;;  %v765_v50 = vadd.f32 %v761_v34, %v753_v10  ;;  %v766_v12 = vadd.f32 %v762_v52, %v754_v37 }
 0x147   : > { %315 = sbr.rel (!%p313_p9) target bundleno = 234 (0xea), region = 96 }
 0x148   : >> { %v767_v48 = vmax.f32 %v763_v53, 0.0  ;;  %v768_v55 = vmax.f32 %v764_v5, 0.0  ;;  %v769_v39 = vmax.f32 %v765_v50, 0.0  ;;  %v770_v58 = vmax.f32 %v766_v12, 0.0 }
 0x14a   : >> { %v1855_v51 = vadd.f32 %v767_v48, %v715_v4   ;;  %v1857_v35 = vadd.f32 %v768_v55, %v716_v44   ;;  %v773_v47 = vadd.f32 %v769_v39, %v717_v38   ;;  %v1859_v33 = vadd.f32 %v770_v58, %v718_v36  }
 0x14c   : >> { %v1942_v40 = vmov %v1857_v35  ;;  %v1943_v57 = vmov %v1859_v33  ;;  %v1945_v34 = vmov %v773_v47  ;;  %v1947_v36 = vmov %v1855_v51 }
 0x14d   : >> { %v1944_v33 = vmov %v1943_v57  ;;  %v1946_v35 = vmov %v1942_v40 }
 0x14e   : > { %779 = sbr.rel (%p1090_p4) target bundleno = 709 (0x2c5), region = 51  ;;  %v1948_v7 = vld [vmem:[#allocation8_spill] sm:$0xff] (!%p1090_p4)  ;;  %v1949_v8 = vlaneseq (!%p1090_p4)  ;;  %vm793_vm1 = vcmask (!%p1090_p4), 130048   ;;  %v1367_v13 = vmov (!%p1090_p4), 1.0|1.0   ;;  %v893_v22 = vld [vmem:[#allocation2 + $0x10] sm:$0xff] (!%p1090_p4) }
 0x14f   : > { %v782_v49 = vadd.s32 (!%p1090_p4), 8, %v1948_v7  ;;  %1113 = vmatprep.mubr.msk.f32.mxu0 (!%p1090_p4), %vm793_vm1, %v1855_v51  ;;  %1116 = vmatprep.mubr.msk.f32.mxu1 (!%p1090_p4), %vm793_vm1, %v773_v47  ;;  %v891_v23 = vld [vmem:[#allocation2] sm:$0xff] (!%p1090_p4)  ;;  %v894_v28 = vld [vmem:[#allocation2 + $0x18] sm:$0xff] (!%p1090_p4)  ;;  %v892_v29 = vld [vmem:[#allocation2 + $0x8] sm:$0xff] (!%p1090_p4) }
 0x150   : > { %v784_v9 = vand.u32 (!%p1090_p4), 127, %v1949_v8 }
 0x152   : > { %v785_v6 = vadd.s32 (!%p1090_p4), %v784_v9, %v1948_v7  ;;  %v786_v56 = vadd.s32 (!%p1090_p4), %v784_v9, %v782_v49 }
 0x154   : > { %vm787_vm2 = vcmp.eq.s32.totalorder (!%p1090_p4), %v785_v6, 15  ;;  %vm788_vm3 = vcmp.eq.s32.totalorder (!%p1090_p4), %v786_v56, 15 }
 0x155   : > { %vm1119_vm4 = vmpackc.low %vm788_vm3, %vm787_vm2 }
 0x156   : > { %1120 = vmatprep.subr.msk.bf16.mxu0 %vm1119_vm4, %v1367_v13  ;;  %1123 = vmatprep.subr.msk.bf16.mxu1 %vm1119_vm4, %v1367_v13 }
 0x157   : > { %1122 = vmatpush3.bf16.msk.msra.mxu0 %vm1119_vm4, %v1367_v13  ;;  %1124 = vmatpush3.bf16.msk.msra.mxu1 %vm1119_vm4, %v1367_v13 }
 0x15a   : > { %1114 = vmatmul.mubr.msk.f32.vlgmr.msra.gmra.mrb[0].mxu0 %vm793_vm1, %v1942_v40  ;;  %1117 = vmatmul.mubr.msk.f32.vlgmr.msra.gmra.mrb[0].mxu1 %vm793_vm1, %v1943_v57 }
 0x22d   : > { %v1115_v14 = vpop.f32.mrb[0].mxu0  ;;  %v1118_v15 = vpop.f32.mrb[0].mxu1 }
 0x22e   : > { %v872_v16 = vpop.f32.mrb[1].mxu0  ;;  %v882_v17 = vpop.f32.mrb[1].mxu1  ;;  %v904_v20 = vsel %vm793_vm1, %v1118_v15, 0.0  ;;  %v898_v21 = vsel %vm793_vm1, %v1115_v14, 0.0 }
 0x22f   : > { %v901_v18 = vsel %vm793_vm1, %v882_v17, 0.0  ;;  %v895_v19 = vsel %vm793_vm1, %v872_v16, 0.0 }
 0x230   : > { %902 = vadd.xlane.f32.xlu1 %v901_v18  ;;  %896 = vadd.xlane.f32.xlu0 %v895_v19 }
 0x234   : > { %905 = vadd.xlane.f32.xlu1 %v904_v20  ;;  %899 = vadd.xlane.f32.xlu0 %v898_v21 }
 0x2bd   : > { %v903_v24 = vpop.xlane.xlu1 %902  ;;  %v897_v25 = vpop.xlane.xlu0 %896 }
 0x2be   : > { %v909_v26 = vadd.f32 %v903_v24, %v893_v22  ;;  %v907_v27 = vadd.f32 %v897_v25, %v891_v23 }
 0x2c0   : > { %914 = vst.msk [vmem:[#allocation2 + $0x10] sm:$0xff] %vm210_vm0, %v909_v26  ;;  %912 = vst.msk [vmem:[#allocation2] sm:$0xff] %vm210_vm0, %v907_v27 }
 0x2c1   : > { %v906_v30 = vpop.xlane.xlu1 %905  ;;  %v900_v31 = vpop.xlane.xlu0 %899 }
 0x2c2   : > { %v910_v32 = vadd.f32 %v906_v30, %v894_v28  ;;  %v908_v45 = vadd.f32 %v900_v31, %v892_v29 }
 0x2c4   : > { %915 = vst.msk [vmem:[#allocation2 + $0x18] sm:$0xff] %vm210_vm0, %v910_v32  ;;  %913 = vst.msk [vmem:[#allocation2 + $0x8] sm:$0xff] %vm210_vm0, %v908_v45 }
 0x2c5 PF: > { %p1099_p5 = scmp.ne.s32.totalorder %s1875_s12, 0 }
 0x2c6   : > { %vm924_vm5 = vcmask (!%p1099_p5), 130048  }
 0x2c7   : > { %919 = sbr.rel (%p1099_p5) target bundleno = 861 (0x35d), region = 55  ;;  %v931_v59 = vsel (!%p1099_p5), %vm924_vm5, %v773_v47, 0.0  ;;  %v925_v35 = vsel (!%p1099_p5), %vm924_vm5, %v1855_v51, 0.0  ;;  %v934_v60 = vsel (!%p1099_p5), %vm924_vm5, %v1943_v57, 0.0  ;;  %v928_v41 = vsel (!%p1099_p5), %vm924_vm5, %v1942_v40, 0.0  ;;  %v922_v42 = vld [vmem:[#allocation2 + $0x10] sm:$0xff] (!%p1099_p5) }
 0x2c8   : > { %932 = vadd.xlane.f32.xlu1 (!%p1099_p5), %v931_v59  ;;  %926 = vadd.xlane.f32.xlu0 (!%p1099_p5), %v925_v35  ;;  %v920_v33 = vld [vmem:[#allocation2] sm:$0xff] (!%p1099_p5) }
 0x2cb   : > { %v923_v0 = vld [vmem:[#allocation2 + $0x18] sm:$0xff] (!%p1099_p5)  ;;  %v921_v11 = vld [vmem:[#allocation2 + $0x8] sm:$0xff] (!%p1099_p5) }
 0x2cc   : > { %935 = vadd.xlane.f32.xlu1 (!%p1099_p5), %v934_v60  ;;  %929 = vadd.xlane.f32.xlu0 (!%p1099_p5), %v928_v41 }
 0x355   : > { %v933_v43 = vpop.xlane.xlu1 %932  ;;  %v927_v61 = vpop.xlane.xlu0 %926 }
 0x356   : > { %v939_v62 = vadd.f32 %v933_v43, %v922_v42  ;;  %v937_v63 = vadd.f32 %v927_v61, %v920_v33 }
 0x358   : > { %944 = vst.msk [vmem:[#allocation2 + $0x10] sm:$0xff] %vm210_vm0, %v939_v62  ;;  %942 = vst.msk [vmem:[#allocation2] sm:$0xff] %vm210_vm0, %v937_v63 }
 0x359   : > { %v936_v54 = vpop.xlane.xlu1 %935  ;;  %v930_v1 = vpop.xlane.xlu0 %929 }
 0x35a   : > { %v940_v46 = vadd.f32 %v936_v54, %v923_v0  ;;  %v938_v34 = vadd.f32 %v930_v1, %v921_v11 }
 0x35c   : > { %945 = vst.msk [vmem:[#allocation2 + $0x18] sm:$0xff] %vm210_vm0, %v940_v46  ;;  %943 = vst.msk [vmem:[#allocation2 + $0x8] sm:$0xff] %vm210_vm0, %v938_v34 }
 0x35d PF: > { %vm989_vm6 = vcmask 253952  }
 0x35f   : > { %v949_v52 = vld [vmem:[#allocation2] sm:$0xff]  ;;  %v951_v37 = vld [vmem:[#allocation2 + $0x10] sm:$0xff] }
 0x360   : > { %v953_v3 = vmul.f32 0.00390625, %v949_v52  ;;  %v955_v4 = vmul.f32 0.00390625, %v951_v37 }
 0x362   : > { %957 = vxpose.xlu0.b32.start [1/4] (short) (narrow) %v953_v3, 8 }
 0x363   : > { %v950_v2 = vld [vmem:[#allocation2 + $0x8] sm:$0xff]  ;;  %v952_v44 = vld [vmem:[#allocation2 + $0x18] sm:$0xff] }
 0x364   : > { %v954_v10 = vmul.f32 0.00390625, %v950_v2  ;;  %v956_v38 = vmul.f32 0.00390625, %v952_v44 }
 0x366   : > { %958 = vxpose.xlu0.b32.cont [2/4] (short) (narrow) %v954_v10, 8 }
 0x36a   : > { %959 = vxpose.xlu0.b32.cont [3/4] (short) (narrow) %v955_v4, 8 }
 0x36e   : > { %960 = vxpose.xlu0.b32.end [4/4] (short) (narrow) %v956_v38, 8 }
 0x3e2   : > { %v973_v36 = vpop.trf.xlu0 }
 0x3e3   : > { %990 = vst.msk [vmem:[%s205_s8] sm:$0x1] %vm989_vm6, %v973_v36 }
 0x3e4 PF: > { %s18_s22 = sadd.s32 1, %s1337_s22   ;;  %s1950_s17 = smov %s1321_s18 }
 0x3e5   : > { %p15_p6 = scmp.ge.s32.totalorder %s18_s22, 4   ;;  %s1951_s18 = smov %s1325_s19 }
 0x3e6   : > { %s1952_s19 = smov %s1445_s28  ;;  %s1953_s20 = smov %s1333_s21 }
 0x3e7   : > { %s1954_s21 = smov %s1956_s23  ;;  %17 = sbr.rel (!%p15_p6) target bundleno = 6 (0x6), region = 107 }
 0x3ee   :  { %1008 = vsyncpa [#allocation6], 1 }
 0x3ef   :  { %1010 = vsyncpa [#allocation6 + $0x1], 1 }

</bundles_post_ra>
